<compile_context>
chip_gen: v5e
topology: v5e:2x2
jax: 0.10.0
libtpu: 0.0.40
codegen_flags: <defaults>
</compile_context>

<pallas_src>
import functools
import math

import jax
import jax.numpy as jnp
from jax.experimental import pallas as pl
from jax.experimental.pallas import tpu as pltpu

_EPS = 1e-5
_LOG2 = math.log(2.0)
NUM_LAYERS = 4


def _ssp(x):
    # ShiftedSoftplus (numerically stable): softplus(x) - log(2)
    sp = jnp.where(x > 20.0, x, jnp.log1p(jnp.exp(jnp.minimum(x, 20.0))))
    return sp - _LOG2


def _const_spec(shape):
    nd = len(shape)
    return pl.BlockSpec(shape, lambda l, _nd=nd: (0,) * _nd)


def _layer_spec(per_layer_shape):
    blk = (1,) + tuple(per_layer_shape)
    nd = len(blk)
    return pl.BlockSpec(blk, lambda l, _nd=nd: (l,) + (0,) * (_nd - 1))


# ----------------------------------------------------------------------------
# Fused kernel: grid iterates over the 4 TMDConv layers; readout on the last step.
# ----------------------------------------------------------------------------
def _make_htnet_kernel(N, F, num_layers):
    F3 = 3 * F

    def kernel(s0_ref, Am_ref, rbfA_ref, U_ref,
               Wms1_ref, bms1_ref, Wms2_ref, bms2_ref, Wmv_ref,
               Wus1_ref, bus1_ref, Wus2_ref, bus2_ref,
               Wfc1_ref, bfc1_ref, Wfc2_ref, bfc2_ref,
               out_ref,
               s_scr, v_scr):
        layer = pl.program_id(0)

        @pl.when(layer == 0)
        def _init():
            s_scr[...] = s0_ref[...]                 # embedding features
            v_scr[...] = jnp.zeros_like(v_scr)       # v0 = zeros, layout (N, 3F)

        s = s_scr[...]                               # (N, F)
        v = v_scr[...]                               # (N, 3F), v[:, c*F:(c+1)*F] = comp c
        Am = Am_ref[...]                             # (N, N) row-normalized adjacency
        U = U_ref[...]                               # (N, N, 3F) unit edge vectors (per comp)

        # ---------------- message1, node part: phi = ms2(ssp(ms1(s_j))) -----------
        h1 = _ssp(jnp.dot(s, Wms1_ref[0], preferred_element_type=jnp.float32)
                  + bms1_ref[0])
        phi = jnp.dot(h1, Wms2_ref[0], preferred_element_type=jnp.float32) + bms2_ref[0]

        # ---------------- message1, edge part: masked filter -----------------------
        # rbfA rows already carry A * cutoff(r); last basis column = 1 folds the bias.
        wflt = jnp.dot(rbfA_ref[...], Wmv_ref[0], preferred_element_type=jnp.float32)
        wflt = wflt.reshape(N, N, F3)                # (N_dst, N_src, 3F)

        m = phi[None, :, :] * wflt                   # phi indexed by source j
        m_v = m[:, :, 0:F]
        m_r = m[:, :, 2 * F:3 * F]
        ds = jnp.sum(m[:, :, F:2 * F], axis=1)       # reduce1: sum over in-edges
        m_v3 = jnp.concatenate([m_v, m_v, m_v], axis=-1)
        m_r3 = jnp.concatenate([m_r, m_r, m_r], axis=-1)
        t1 = jnp.sum(m_v3 * v[None, :, :], axis=1)   # v_j * v_
        t2 = jnp.sum(m_r3 * U, axis=1)               # r_ * vec/r

        s_new = s + ds                               # (N, F)
        v_new = v + t1 + t2                          # (N, 3F)

        # ---------------- message2 / reduce2 --------------------------------------
        h2 = _ssp(jnp.dot(s_new, Wus1_ref[0], preferred_element_type=jnp.float32)
                  + bus1_ref[0])
        S2 = jnp.dot(h2, Wus2_ref[0], preferred_element_type=jnp.float32) + bus2_ref[0]
        Smean = jnp.dot(Am, S2, preferred_element_type=jnp.float32)   # mean over in-edges
        avv = Smean[:, 0:F]
        asv = Smean[:, F:2 * F]
        ass = Smean[:, 2 * F:3 * F]

        uv = jnp.dot(Am, v_new, preferred_element_type=jnp.float32)   # mean of v_new[j]
        sq = uv[:, 0:F] ** 2 + uv[:, F:2 * F] ** 2 + uv[:, 2 * F:3 * F] ** 2
        q = sq * pl.reciprocal(sq + _EPS, approx=True)   # == ((uv/norm)**2).sum(-1)
        s_out = s_new + q * asv + ass
        v_out = v_new + uv * jnp.concatenate([avv, avv, avv], axis=-1)

        s_scr[...] = s_out
        v_scr[...] = v_out

        # ---------------- readout on the last layer -------------------------------
        @pl.when(layer == num_layers - 1)
        def _readout():
            pooled = jnp.sum(s_out, axis=0, keepdims=True)             # SumPooling
            hfc = _ssp(jnp.dot(pooled, Wfc1_ref[...],
                               preferred_element_type=jnp.float32) + bfc1_ref[...])
            out_ref[...] = (jnp.dot(hfc, Wfc2_ref[...],
                                    preferred_element_type=jnp.float32) + bfc2_ref[...])

    return kernel


# ----------------------------------------------------------------------------
# Edge geometry (plain-JAX glue, computed once per forward, tiny).
# Replaces the DGL radius-graph / triadic-subgraph construction.
# TODO(synk): dgl.in_subgraph/out_subgraph for multi-element triadic subgraphs is a
# host-side graph op; with a single element type the subgraph == full radius graph.
# ----------------------------------------------------------------------------
def _edge_geometry(positions, rc, l, F):
    N = positions.shape[0]
    x = positions.astype(jnp.float32)
    diff = x[None, :, :] - x[:, None, :]             # diff[d, j, :] = x_src - x_dst
    r2 = jnp.sum(diff * diff, axis=-1)
    r = jnp.sqrt(r2 + _EPS)
    inv_r = 1.0 / r
    off_diag = 1.0 - jnp.eye(N, dtype=jnp.float32)
    A = jnp.where(r < rc, 1.0, 0.0) * off_diag       # A[d, j] = 1 iff edge j -> d
    deg = jnp.sum(A, axis=1, keepdims=True)
    Amean = A / jnp.maximum(deg, 1.0)                # row-normalized: mean aggregator

    cut = 0.5 * (jnp.cos(jnp.pi * r / rc) + 1.0)     # per-edge cosine cutoff on r
    coeff = (A * cut)[..., None]                     # adjacency mask folded early
    k = jnp.arange(1, l + 1, dtype=jnp.float32)
    rbf = (math.sqrt(2.0 / rc) * jnp.sin((jnp.pi / rc) * k * r[..., None])
           * inv_r[..., None])                       # (N, N, L) Bessel basis
    rbf_aug = jnp.concatenate([rbf, jnp.ones((N, N, 1), jnp.float32)], axis=-1) * coeff
    rbfA = rbf_aug.reshape(N * N, l + 1)             # (N*N, L+1), bias column appended

    U = jnp.repeat(diff * inv_r[..., None], F, axis=-1)   # (N, N, 3F): U[d,j,c*F+f]=uvec_c
    return Amean, rbfA, U


# ----------------------------------------------------------------------------
# Full HTNet forward (single pallas_call).
# ----------------------------------------------------------------------------
@functools.partial(jax.jit, static_argnames=("rc", "l"))
def htnet_forward(atomic_number, positions, embed, layer_params, fc_params, *, rc, l):
    N = positions.shape[0]
    F = embed.shape[1]
    num_layers = layer_params["Wms1"].shape[0]

    s0 = jnp.take(embed, atomic_number, axis=0)      # nn.Embedding lookup (glue gather)
    Amean, rbfA, U = _edge_geometry(positions, rc, l, F)
    Wfc1, bfc1, Wfc2, bfc2 = fc_params

    kernel = _make_htnet_kernel(N, F, num_layers)
    in_specs = [
        _const_spec((N, F)),             # s0
        _const_spec((N, N)),             # Amean
        _const_spec((N * N, l + 1)),     # rbfA
        _const_spec((N, N, 3 * F)),      # U
        _layer_spec((F, F)),             # Wms1
        _layer_spec((1, F)),             # bms1
        _layer_spec((F, 3 * F)),         # Wms2
        _layer_spec((1, 3 * F)),         # bms2
        _layer_spec((l + 1, 3 * F)),     # Wmv (bias folded as last row)
        _layer_spec((F, F)),             # Wus1
        _layer_spec((1, F)),             # bus1
        _layer_spec((F, 3 * F)),         # Wus2
        _layer_spec((1, 3 * F)),         # bus2
        _const_spec((F, F)),             # Wfc1
        _const_spec((1, F)),             # bfc1
        _const_spec((F, 1)),             # Wfc2
        _const_spec((1, 1)),             # bfc2
    ]

    pred = pl.pallas_call(
        kernel,
        out_shape=jax.ShapeDtypeStruct((1, 1), jnp.float32),
        grid=(num_layers,),
        in_specs=in_specs,
        out_specs=pl.BlockSpec((1, 1), lambda li: (0, 0)),
        scratch_shapes=[pltpu.VMEM((N, F), jnp.float32),       # scalar state s
                        pltpu.VMEM((N, 3 * F), jnp.float32)],  # vector state v (comp-minor)
        compiler_params=pltpu.CompilerParams(dimension_semantics=("arbitrary",)),
    )(s0, Amean, rbfA, U,
      layer_params["Wms1"], layer_params["bms1"],
      layer_params["Wms2"], layer_params["bms2"],
      layer_params["Wmv_aug"],
      layer_params["Wus1"], layer_params["bus1"],
      layer_params["Wus2"], layer_params["bus2"],
      Wfc1, bfc1, Wfc2, bfc2)
    return pred


# ----------------------------------------------------------------------------
# Parameter initialization (deterministic, synthetic — no checkpoints).
# ----------------------------------------------------------------------------
def _init_linear(key, fin, fout):
    kw, kb = jax.random.split(key)
    lim = 1.0 / math.sqrt(fin)
    W = jax.random.uniform(kw, (fin, fout), jnp.float32, -lim, lim)   # stored (in, out)
    b = jax.random.uniform(kb, (1, fout), jnp.float32, -lim, lim)
    return W, b


def _init_tmdconv(key, F, L):
    ks = jax.random.split(key, 5)
    Wms1, bms1 = _init_linear(ks[0], F, F)
    Wms2, bms2 = _init_linear(ks[1], F, 3 * F)
    Wmv, bmv = _init_linear(ks[2], L, 3 * F)
    Wus1, bus1 = _init_linear(ks[3], F, F)
    Wus2, bus2 = _init_linear(ks[4], F, 3 * F)
    Wmv_aug = jnp.concatenate([Wmv, bmv], axis=0)    # (L+1, 3F): mv bias folded as extra row
    return dict(Wms1=Wms1, bms1=bms1, Wms2=Wms2, bms2=bms2, Wmv_aug=Wmv_aug,
                Wus1=Wus1, bus1=bus1, Wus2=Wus2, bus2=bus2)


def _stack_layers(layer_list):
    return {k: jnp.stack([p[k] for p in layer_list], axis=0) for k in layer_list[0]}


if __name__ == "__main__":
    key = jax.random.PRNGKey(0)
    N = 8              # number of atoms (nodes)
    F = 32             # in_feats
    L = 8              # l (RBF size)
    RC = 6.0           # cutoff radius (all pairs within cutoff -> complete graph)
    NUM_SPECIES = 100  # len(atomic_numbers) embedding table size

    k_emb, k_pos, k_c1, k_c2, k_c3, k_c4, k_fc1, k_fc2 = jax.random.split(key, 8)
    embed = 0.1 * jax.random.normal(k_emb, (NUM_SPECIES, F), jnp.float32)
    positions = jax.random.uniform(k_pos, (N, 3), jnp.float32, 0.0, 3.0)
    atomic_number = jnp.full((N,), 29, dtype=jnp.int32)          # all 'Cu'

    layer_params = _stack_layers(
        [_init_tmdconv(k, F, L) for k in (k_c1, k_c2, k_c3, k_c4)])
    Wfc1, bfc1 = _init_linear(k_fc1, F, F)
    Wfc2, bfc2 = _init_linear(k_fc2, F, 1)

    pred = htnet_forward(atomic_number, positions, embed, layer_params,
                         (Wfc1, bfc1, Wfc2, bfc2), rc=RC, l=L)
    jax.block_until_ready(pred)
    assert pred.shape == (1, 1) and bool(jnp.isfinite(pred).all())
    print("KERNEL_OK")
</pallas_src>

<mosaic_0001>
module attributes {stable_mosaic.version = 11 : i64} {
  func.func @kernel(%arg0: i32, %arg1: memref<8x32xf32, #tpu.memory_space<vmem>>, %arg2: memref<8x8xf32, #tpu.memory_space<vmem>>, %arg3: memref<64x9xf32, #tpu.memory_space<vmem>>, %arg4: memref<8x8x96xf32, #tpu.memory_space<vmem>>, %arg5: memref<1x32x32xf32, #tpu.memory_space<vmem>>, %arg6: memref<1x1x32xf32, #tpu.memory_space<vmem>>, %arg7: memref<1x32x96xf32, #tpu.memory_space<vmem>>, %arg8: memref<1x1x96xf32, #tpu.memory_space<vmem>>, %arg9: memref<1x9x96xf32, #tpu.memory_space<vmem>>, %arg10: memref<1x32x32xf32, #tpu.memory_space<vmem>>, %arg11: memref<1x1x32xf32, #tpu.memory_space<vmem>>, %arg12: memref<1x32x96xf32, #tpu.memory_space<vmem>>, %arg13: memref<1x1x96xf32, #tpu.memory_space<vmem>>, %arg14: memref<32x32xf32, #tpu.memory_space<vmem>>, %arg15: memref<1x32xf32, #tpu.memory_space<vmem>>, %arg16: memref<32x1xf32, #tpu.memory_space<vmem>>, %arg17: memref<1x1xf32, #tpu.memory_space<vmem>>, %arg18: memref<1x1xf32, #tpu.memory_space<vmem>>, %arg19: memref<8x32xf32, #tpu.memory_space<vmem>>, %arg20: memref<8x96xf32, #tpu.memory_space<vmem>>) attributes {dimension_semantics = [#tpu.dimension_semantics<arbitrary>], iteration_bounds = array<i64: 4>, scalar_prefetch = 0 : i64, scratch_operands = 2 : i64, tpu.core_type = #tpu.core_type<tc>, window_params = [{pipeline_mode = #tpu.pipeline_mode<synchronous>, transform_indices = @transform_0, window_bounds = array<i64: 8, 32>}, {pipeline_mode = #tpu.pipeline_mode<synchronous>, transform_indices = @transform_1, window_bounds = array<i64: 8, 8>}, {pipeline_mode = #tpu.pipeline_mode<synchronous>, transform_indices = @transform_2, window_bounds = array<i64: 64, 9>}, {pipeline_mode = #tpu.pipeline_mode<synchronous>, transform_indices = @transform_3, window_bounds = array<i64: 8, 8, 96>}, {transform_indices = @transform_4, window_bounds = array<i64: 1, 32, 32>}, {transform_indices = @transform_5, window_bounds = array<i64: 1, 1, 32>}, {transform_indices = @transform_6, window_bounds = array<i64: 1, 32, 96>}, {transform_indices = @transform_7, window_bounds = array<i64: 1, 1, 96>}, {transform_indices = @transform_8, window_bounds = array<i64: 1, 9, 96>}, {transform_indices = @transform_9, window_bounds = array<i64: 1, 32, 32>}, {transform_indices = @transform_10, window_bounds = array<i64: 1, 1, 32>}, {transform_indices = @transform_11, window_bounds = array<i64: 1, 32, 96>}, {transform_indices = @transform_12, window_bounds = array<i64: 1, 1, 96>}, {pipeline_mode = #tpu.pipeline_mode<synchronous>, transform_indices = @transform_13, window_bounds = array<i64: 32, 32>}, {pipeline_mode = #tpu.pipeline_mode<synchronous>, transform_indices = @transform_14, window_bounds = array<i64: 1, 32>}, {pipeline_mode = #tpu.pipeline_mode<synchronous>, transform_indices = @transform_15, window_bounds = array<i64: 32, 1>}, {pipeline_mode = #tpu.pipeline_mode<synchronous>, transform_indices = @transform_16, window_bounds = array<i64: 1, 1>}, {pipeline_mode = #tpu.pipeline_mode<synchronous>, transform_indices = @transform_17, window_bounds = array<i64: 1, 1>}]} {
    %c0_i32 = arith.constant 0 : i32
    %0 = arith.cmpi eq, %arg0, %c0_i32 : i32
    %1 = arith.extui %0 : i1 to i32
    %c0_i32_0 = arith.constant 0 : i32
    %2 = arith.cmpi ne, %1, %c0_i32_0 : i32
    scf.if %2 {
      %c0_59 = arith.constant 0 : index
      %c0_60 = arith.constant 0 : index
      %104 = vector.load %arg1[%c0_59, %c0_60] : memref<8x32xf32, #tpu.memory_space<vmem>>, vector<8x32xf32>
      %c0_61 = arith.constant 0 : index
      %c0_62 = arith.constant 0 : index
      %105 = vector.load %arg19[%c0_61, %c0_62] : memref<8x32xf32, #tpu.memory_space<vmem>>, vector<8x32xf32>
      tpu.vector_store %arg19[%c0_61, %c0_62], %104 {strides = array<i32>} : memref<8x32xf32, #tpu.memory_space<vmem>>, vector<8x32xf32>,
      %cst_63 = arith.constant 0.000000e+00 : f32
      %106 = vector.broadcast %cst_63 : f32 to vector<8x96xf32>
      %c0_64 = arith.constant 0 : index
      %c0_65 = arith.constant 0 : index
      %107 = vector.load %arg20[%c0_64, %c0_65] : memref<8x96xf32, #tpu.memory_space<vmem>>, vector<8x96xf32>
      tpu.vector_store %arg20[%c0_64, %c0_65], %106 {strides = array<i32>} : memref<8x96xf32, #tpu.memory_space<vmem>>, vector<8x96xf32>,
    } else {
    }
    %c0 = arith.constant 0 : index
    %c0_1 = arith.constant 0 : index
    %3 = vector.load %arg19[%c0, %c0_1] : memref<8x32xf32, #tpu.memory_space<vmem>>, vector<8x32xf32>
    %c0_2 = arith.constant 0 : index
    %c0_3 = arith.constant 0 : index
    %4 = vector.load %arg20[%c0_2, %c0_3] : memref<8x96xf32, #tpu.memory_space<vmem>>, vector<8x96xf32>
    %c0_4 = arith.constant 0 : index
    %c0_5 = arith.constant 0 : index
    %5 = vector.load %arg2[%c0_4, %c0_5] : memref<8x8xf32, #tpu.memory_space<vmem>>, vector<8x8xf32>
    %c0_6 = arith.constant 0 : index
    %c0_7 = arith.constant 0 : index
    %c0_8 = arith.constant 0 : index
    %6 = vector.load %arg4[%c0_6, %c0_7, %c0_8] : memref<8x8x96xf32, #tpu.memory_space<vmem>>, vector<8x8x96xf32>
    %c0_9 = arith.constant 0 : index
    %c0_10 = arith.constant 0 : index
    %c0_11 = arith.constant 0 : index
    %7 = vector.load %arg5[%c0_9, %c0_10, %c0_11] : memref<1x32x32xf32, #tpu.memory_space<vmem>>, vector<1x32x32xf32>
    %8 = vector.shape_cast %7 : vector<1x32x32xf32> to vector<32x32xf32>
    %cst = arith.constant dense<0.000000e+00> : vector<8x32xf32>
    %9 = tpu.matmul %3, %8, %cst {dimension_numbers = #tpu.dot_dimension_numbers<[1], [0], [0], [1], [0, 0, 1, 1], [], []>} : vector<8x32xf32>, vector<32x32xf32>, vector<8x32xf32> -> vector<8x32xf32>
    %c0_12 = arith.constant 0 : index
    %c0_13 = arith.constant 0 : index
    %c0_14 = arith.constant 0 : index
    %10 = vector.load %arg6[%c0_12, %c0_13, %c0_14] : memref<1x1x32xf32, #tpu.memory_space<vmem>>, vector<1x1x32xf32>
    %11 = vector.shape_cast %10 : vector<1x1x32xf32> to vector<1x32xf32>
    %12 = vector.broadcast %11 : vector<1x32xf32> to vector<8x32xf32>
    %13 = arith.addf %9, %12 : vector<8x32xf32>
    %cst_15 = arith.constant 2.000000e+01 : f32
    %14 = vector.broadcast %cst_15 : f32 to vector<8x32xf32>
    %15 = arith.cmpf ogt, %13, %14 : vector<8x32xf32>
    %cst_16 = arith.constant 2.000000e+01 : f32
    %16 = vector.broadcast %cst_16 : f32 to vector<8x32xf32>
    %17 = arith.minimumf %13, %16 : vector<8x32xf32>
    %18 = math.exp %17 : vector<8x32xf32>
    %19 = math.log1p %18 : vector<8x32xf32>
    %20 = arith.select %15, %13, %19 : vector<8x32xi1>, vector<8x32xf32>
    %cst_17 = arith.constant 0.693147182 : f32
    %21 = vector.broadcast %cst_17 : f32 to vector<8x32xf32>
    %22 = arith.subf %20, %21 : vector<8x32xf32>
    %c0_18 = arith.constant 0 : index
    %c0_19 = arith.constant 0 : index
    %c0_20 = arith.constant 0 : index
    %23 = vector.load %arg7[%c0_18, %c0_19, %c0_20] : memref<1x32x96xf32, #tpu.memory_space<vmem>>, vector<1x32x96xf32>
    %24 = vector.shape_cast %23 : vector<1x32x96xf32> to vector<32x96xf32>
    %cst_21 = arith.constant dense<0.000000e+00> : vector<8x96xf32>
    %25 = tpu.matmul %22, %24, %cst_21 {dimension_numbers = #tpu.dot_dimension_numbers<[1], [0], [0], [1], [0, 0, 1, 1], [], []>} : vector<8x32xf32>, vector<32x96xf32>, vector<8x96xf32> -> vector<8x96xf32>
    %c0_22 = arith.constant 0 : index
    %c0_23 = arith.constant 0 : index
    %c0_24 = arith.constant 0 : index
    %26 = vector.load %arg8[%c0_22, %c0_23, %c0_24] : memref<1x1x96xf32, #tpu.memory_space<vmem>>, vector<1x1x96xf32>
    %27 = vector.shape_cast %26 : vector<1x1x96xf32> to vector<1x96xf32>
    %28 = vector.broadcast %27 : vector<1x96xf32> to vector<8x96xf32>
    %29 = arith.addf %25, %28 : vector<8x96xf32>
    %c0_25 = arith.constant 0 : index
    %c0_26 = arith.constant 0 : index
    %30 = vector.load %arg3[%c0_25, %c0_26] : memref<64x9xf32, #tpu.memory_space<vmem>>, vector<64x9xf32>
    %c0_27 = arith.constant 0 : index
    %c0_28 = arith.constant 0 : index
    %c0_29 = arith.constant 0 : index
    %31 = vector.load %arg9[%c0_27, %c0_28, %c0_29] : memref<1x9x96xf32, #tpu.memory_space<vmem>>, vector<1x9x96xf32>
    %32 = vector.shape_cast %31 : vector<1x9x96xf32> to vector<9x96xf32>
    %cst_30 = arith.constant dense<0.000000e+00> : vector<64x96xf32>
    %33 = tpu.matmul %30, %32, %cst_30 {dimension_numbers = #tpu.dot_dimension_numbers<[1], [0], [0], [1], [0, 0, 1, 1], [], []>} : vector<64x9xf32>, vector<9x96xf32>, vector<64x96xf32> -> vector<64x96xf32>
    %34 = vector.shape_cast %33 : vector<64x96xf32> to vector<8x8x96xf32>
    %35 = vector.shape_cast %29 : vector<8x96xf32> to vector<1x8x96xf32>
    %36 = vector.broadcast %35 : vector<1x8x96xf32> to vector<8x8x96xf32>
    %37 = arith.mulf %36, %34 : vector<8x8x96xf32>
    %38 = vector.extract_strided_slice %37 {offsets = [0, 0, 0], sizes = [8, 8, 32], strides = [1, 1, 1]} : vector<8x8x96xf32> to vector<8x8x32xf32>
    %39 = vector.extract_strided_slice %37 {offsets = [0, 0, 64], sizes = [8, 8, 32], strides = [1, 1, 1]} : vector<8x8x96xf32> to vector<8x8x32xf32>
    %40 = vector.extract_strided_slice %37 {offsets = [0, 0, 32], sizes = [8, 8, 32], strides = [1, 1, 1]} : vector<8x8x96xf32> to vector<8x8x32xf32>
    %cst_31 = arith.constant dense<0.000000e+00> : vector<8x32xf32>
    %41 = vector.multi_reduction <add>, %40, %cst_31 [1] : vector<8x8x32xf32> to vector<8x32xf32>
    %42 = tpu.concatenate %38, %38, %38 in 2 : vector<8x8x32xf32>, vector<8x8x32xf32>, vector<8x8x32xf32> -> vector<8x8x96xf32>
    %43 = tpu.concatenate %39, %39, %39 in 2 : vector<8x8x32xf32>, vector<8x8x32xf32>, vector<8x8x32xf32> -> vector<8x8x96xf32>
    %44 = vector.shape_cast %4 : vector<8x96xf32> to vector<1x8x96xf32>
    %45 = vector.broadcast %44 : vector<1x8x96xf32> to vector<8x8x96xf32>
    %46 = arith.mulf %42, %45 : vector<8x8x96xf32>
    %cst_32 = arith.constant dense<0.000000e+00> : vector<8x96xf32>
    %47 = vector.multi_reduction <add>, %46, %cst_32 [1] : vector<8x8x96xf32> to vector<8x96xf32>
    %48 = arith.mulf %43, %6 : vector<8x8x96xf32>
    %cst_33 = arith.constant dense<0.000000e+00> : vector<8x96xf32>
    %49 = vector.multi_reduction <add>, %48, %cst_33 [1] : vector<8x8x96xf32> to vector<8x96xf32>
    %50 = arith.addf %3, %41 : vector<8x32xf32>
    %51 = arith.addf %4, %47 : vector<8x96xf32>
    %52 = arith.addf %51, %49 : vector<8x96xf32>
    %c0_34 = arith.constant 0 : index
    %c0_35 = arith.constant 0 : index
    %c0_36 = arith.constant 0 : index
    %53 = vector.load %arg10[%c0_34, %c0_35, %c0_36] : memref<1x32x32xf32, #tpu.memory_space<vmem>>, vector<1x32x32xf32>
    %54 = vector.shape_cast %53 : vector<1x32x32xf32> to vector<32x32xf32>
    %cst_37 = arith.constant dense<0.000000e+00> : vector<8x32xf32>
    %55 = tpu.matmul %50, %54, %cst_37 {dimension_numbers = #tpu.dot_dimension_numbers<[1], [0], [0], [1], [0, 0, 1, 1], [], []>} : vector<8x32xf32>, vector<32x32xf32>, vector<8x32xf32> -> vector<8x32xf32>
    %c0_38 = arith.constant 0 : index
    %c0_39 = arith.constant 0 : index
    %c0_40 = arith.constant 0 : index
    %56 = vector.load %arg11[%c0_38, %c0_39, %c0_40] : memref<1x1x32xf32, #tpu.memory_space<vmem>>, vector<1x1x32xf32>
    %57 = vector.shape_cast %56 : vector<1x1x32xf32> to vector<1x32xf32>
    %58 = vector.broadcast %57 : vector<1x32xf32> to vector<8x32xf32>
    %59 = arith.addf %55, %58 : vector<8x32xf32>
    %cst_41 = arith.constant 2.000000e+01 : f32
    %60 = vector.broadcast %cst_41 : f32 to vector<8x32xf32>
    %61 = arith.cmpf ogt, %59, %60 : vector<8x32xf32>
    %cst_42 = arith.constant 2.000000e+01 : f32
    %62 = vector.broadcast %cst_42 : f32 to vector<8x32xf32>
    %63 = arith.minimumf %59, %62 : vector<8x32xf32>
    %64 = math.exp %63 : vector<8x32xf32>
    %65 = math.log1p %64 : vector<8x32xf32>
    %66 = arith.select %61, %59, %65 : vector<8x32xi1>, vector<8x32xf32>
    %cst_43 = arith.constant 0.693147182 : f32
    %67 = vector.broadcast %cst_43 : f32 to vector<8x32xf32>
    %68 = arith.subf %66, %67 : vector<8x32xf32>
    %c0_44 = arith.constant 0 : index
    %c0_45 = arith.constant 0 : index
    %c0_46 = arith.constant 0 : index
    %69 = vector.load %arg12[%c0_44, %c0_45, %c0_46] : memref<1x32x96xf32, #tpu.memory_space<vmem>>, vector<1x32x96xf32>
    %70 = vector.shape_cast %69 : vector<1x32x96xf32> to vector<32x96xf32>
    %cst_47 = arith.constant dense<0.000000e+00> : vector<8x96xf32>
    %71 = tpu.matmul %68, %70, %cst_47 {dimension_numbers = #tpu.dot_dimension_numbers<[1], [0], [0], [1], [0, 0, 1, 1], [], []>} : vector<8x32xf32>, vector<32x96xf32>, vector<8x96xf32> -> vector<8x96xf32>
    %c0_48 = arith.constant 0 : index
    %c0_49 = arith.constant 0 : index
    %c0_50 = arith.constant 0 : index
    %72 = vector.load %arg13[%c0_48, %c0_49, %c0_50] : memref<1x1x96xf32, #tpu.memory_space<vmem>>, vector<1x1x96xf32>
    %73 = vector.shape_cast %72 : vector<1x1x96xf32> to vector<1x96xf32>
    %74 = vector.broadcast %73 : vector<1x96xf32> to vector<8x96xf32>
    %75 = arith.addf %71, %74 : vector<8x96xf32>
    %cst_51 = arith.constant dense<0.000000e+00> : vector<8x96xf32>
    %76 = tpu.matmul %5, %75, %cst_51 {dimension_numbers = #tpu.dot_dimension_numbers<[1], [0], [0], [1], [0, 0, 1, 1], [], []>} : vector<8x8xf32>, vector<8x96xf32>, vector<8x96xf32> -> vector<8x96xf32>
    %77 = vector.extract_strided_slice %76 {offsets = [0, 0], sizes = [8, 32], strides = [1, 1]} : vector<8x96xf32> to vector<8x32xf32>
    %78 = vector.extract_strided_slice %76 {offsets = [0, 32], sizes = [8, 32], strides = [1, 1]} : vector<8x96xf32> to vector<8x32xf32>
    %79 = vector.extract_strided_slice %76 {offsets = [0, 64], sizes = [8, 32], strides = [1, 1]} : vector<8x96xf32> to vector<8x32xf32>
    %cst_52 = arith.constant dense<0.000000e+00> : vector<8x96xf32>
    %80 = tpu.matmul %5, %52, %cst_52 {dimension_numbers = #tpu.dot_dimension_numbers<[1], [0], [0], [1], [0, 0, 1, 1], [], []>} : vector<8x8xf32>, vector<8x96xf32>, vector<8x96xf32> -> vector<8x96xf32>
    %81 = vector.extract_strided_slice %80 {offsets = [0, 0], sizes = [8, 32], strides = [1, 1]} : vector<8x96xf32> to vector<8x32xf32>
    %82 = arith.mulf %81, %81 : vector<8x32xf32>
    %83 = vector.extract_strided_slice %80 {offsets = [0, 32], sizes = [8, 32], strides = [1, 1]} : vector<8x96xf32> to vector<8x32xf32>
    %84 = arith.mulf %83, %83 : vector<8x32xf32>
    %85 = arith.addf %82, %84 : vector<8x32xf32>
    %86 = vector.extract_strided_slice %80 {offsets = [0, 64], sizes = [8, 32], strides = [1, 1]} : vector<8x96xf32> to vector<8x32xf32>
    %87 = arith.mulf %86, %86 : vector<8x32xf32>
    %88 = arith.addf %85, %87 : vector<8x32xf32>
    %cst_53 = arith.constant 9.99999974E-6 : f32
    %89 = vector.broadcast %cst_53 : f32 to vector<8x32xf32>
    %90 = arith.addf %88, %89 : vector<8x32xf32>
    %91 = tpu.reciprocal %90 {approx = true} : vector<8x32xf32> -> vector<8x32xf32>
    %92 = arith.mulf %88, %91 : vector<8x32xf32>
    %93 = arith.mulf %92, %78 : vector<8x32xf32>
    %94 = arith.addf %50, %93 : vector<8x32xf32>
    %95 = arith.addf %94, %79 : vector<8x32xf32>
    %96 = tpu.concatenate %77, %77, %77 in 1 : vector<8x32xf32>, vector<8x32xf32>, vector<8x32xf32> -> vector<8x96xf32>
    %97 = arith.mulf %80, %96 : vector<8x96xf32>
    %98 = arith.addf %52, %97 : vector<8x96xf32>
    %c0_54 = arith.constant 0 : index
    %c0_55 = arith.constant 0 : index
    %99 = vector.load %arg19[%c0_54, %c0_55] : memref<8x32xf32, #tpu.memory_space<vmem>>, vector<8x32xf32>
    tpu.vector_store %arg19[%c0_54, %c0_55], %95 {strides = array<i32>} : memref<8x32xf32, #tpu.memory_space<vmem>>, vector<8x32xf32>,
    %c0_56 = arith.constant 0 : index
    %c0_57 = arith.constant 0 : index
    %100 = vector.load %arg20[%c0_56, %c0_57] : memref<8x96xf32, #tpu.memory_space<vmem>>, vector<8x96xf32>
    tpu.vector_store %arg20[%c0_56, %c0_57], %98 {strides = array<i32>} : memref<8x96xf32, #tpu.memory_space<vmem>>, vector<8x96xf32>,
    %c3_i32 = arith.constant 3 : i32
    %101 = arith.cmpi eq, %arg0, %c3_i32 : i32
    %102 = arith.extui %101 : i1 to i32
    %c0_i32_58 = arith.constant 0 : i32
    %103 = arith.cmpi ne, %102, %c0_i32_58 : i32
    scf.if %103 {
      %cst_59 = arith.constant dense<0.000000e+00> : vector<32xf32>
      %104 = vector.multi_reduction <add>, %95, %cst_59 [0] : vector<8x32xf32> to vector<32xf32>
      %105 = vector.shape_cast %104 : vector<32xf32> to vector<1x32xf32>
      %c0_60 = arith.constant 0 : index
      %c0_61 = arith.constant 0 : index
      %106 = vector.load %arg14[%c0_60, %c0_61] : memref<32x32xf32, #tpu.memory_space<vmem>>, vector<32x32xf32>
      %cst_62 = arith.constant dense<0.000000e+00> : vector<1x32xf32>
      %107 = tpu.matmul %105, %106, %cst_62 {dimension_numbers = #tpu.dot_dimension_numbers<[1], [0], [0], [1], [0, 0, 1, 1], [], []>} : vector<1x32xf32>, vector<32x32xf32>, vector<1x32xf32> -> vector<1x32xf32>
      %c0_63 = arith.constant 0 : index
      %c0_64 = arith.constant 0 : index
      %108 = vector.load %arg15[%c0_63, %c0_64] : memref<1x32xf32, #tpu.memory_space<vmem>>, vector<1x32xf32>
      %109 = arith.addf %107, %108 : vector<1x32xf32>
      %cst_65 = arith.constant 2.000000e+01 : f32
      %110 = vector.broadcast %cst_65 : f32 to vector<1x32xf32>
      %111 = arith.cmpf ogt, %109, %110 : vector<1x32xf32>
      %cst_66 = arith.constant 2.000000e+01 : f32
      %112 = vector.broadcast %cst_66 : f32 to vector<1x32xf32>
      %113 = arith.minimumf %109, %112 : vector<1x32xf32>
      %114 = math.exp %113 : vector<1x32xf32>
      %115 = math.log1p %114 : vector<1x32xf32>
      %116 = arith.select %111, %109, %115 : vector<1x32xi1>, vector<1x32xf32>
      %cst_67 = arith.constant 0.693147182 : f32
      %117 = vector.broadcast %cst_67 : f32 to vector<1x32xf32>
      %118 = arith.subf %116, %117 : vector<1x32xf32>
      %c0_68 = arith.constant 0 : index
      %c0_69 = arith.constant 0 : index
      %119 = vector.load %arg16[%c0_68, %c0_69] : memref<32x1xf32, #tpu.memory_space<vmem>>, vector<32x1xf32>
      %cst_70 = arith.constant dense<0.000000e+00> : vector<1x1xf32>
      %120 = tpu.matmul %118, %119, %cst_70 {dimension_numbers = #tpu.dot_dimension_numbers<[1], [0], [0], [1], [0, 0, 1, 1], [], []>} : vector<1x32xf32>, vector<32x1xf32>, vector<1x1xf32> -> vector<1x1xf32>
      %c0_71 = arith.constant 0 : index
      %c0_72 = arith.constant 0 : index
      %121 = vector.load %arg17[%c0_71, %c0_72] : memref<1x1xf32, #tpu.memory_space<vmem>>, vector<1x1xf32>
      %122 = arith.addf %120, %121 : vector<1x1xf32>
      %c0_73 = arith.constant 0 : index
      %c0_74 = arith.constant 0 : index
      %123 = vector.load %arg18[%c0_73, %c0_74] : memref<1x1xf32, #tpu.memory_space<vmem>>, vector<1x1xf32>
      tpu.vector_store %arg18[%c0_73, %c0_74], %122 {strides = array<i32>} : memref<1x1xf32, #tpu.memory_space<vmem>>, vector<1x1xf32>,
    } else {
    }
    return
  }
  func.func @transform_0(%arg0: i32) -> (i32, i32) {
    %c0_i32 = arith.constant 0 : i32
    %c0_i32_0 = arith.constant 0 : i32
    %c0_i32_1 = arith.constant 0 : i32
    return %c0_i32, %c0_i32_0 : i32, i32
  }
  func.func @transform_1(%arg0: i32) -> (i32, i32) {
    %c0_i32 = arith.constant 0 : i32
    %c0_i32_0 = arith.constant 0 : i32
    %c0_i32_1 = arith.constant 0 : i32
    return %c0_i32, %c0_i32_0 : i32, i32
  }
  func.func @transform_2(%arg0: i32) -> (i32, i32) {
    %c0_i32 = arith.constant 0 : i32
    %c0_i32_0 = arith.constant 0 : i32
    %c0_i32_1 = arith.constant 0 : i32
    return %c0_i32, %c0_i32_0 : i32, i32
  }
  func.func @transform_3(%arg0: i32) -> (i32, i32, i32) {
    %c0_i32 = arith.constant 0 : i32
    %c0_i32_0 = arith.constant 0 : i32
    %c0_i32_1 = arith.constant 0 : i32
    %c0_i32_2 = arith.constant 0 : i32
    return %c0_i32, %c0_i32_0, %c0_i32_1 : i32, i32, i32
  }
  func.func @transform_4(%arg0: i32) -> (i32, i32, i32) {
    %c0_i32 = arith.constant 0 : i32
    %c0_i32_0 = arith.constant 0 : i32
    %c0_i32_1 = arith.constant 0 : i32
    return %arg0, %c0_i32, %c0_i32_0 : i32, i32, i32
  }
  func.func @transform_5(%arg0: i32) -> (i32, i32, i32) {
    %c0_i32 = arith.constant 0 : i32
    %c0_i32_0 = arith.constant 0 : i32
    %c0_i32_1 = arith.constant 0 : i32
    return %arg0, %c0_i32, %c0_i32_0 : i32, i32, i32
  }
  func.func @transform_6(%arg0: i32) -> (i32, i32, i32) {
    %c0_i32 = arith.constant 0 : i32
    %c0_i32_0 = arith.constant 0 : i32
    %c0_i32_1 = arith.constant 0 : i32
    return %arg0, %c0_i32, %c0_i32_0 : i32, i32, i32
  }
  func.func @transform_7(%arg0: i32) -> (i32, i32, i32) {
    %c0_i32 = arith.constant 0 : i32
    %c0_i32_0 = arith.constant 0 : i32
    %c0_i32_1 = arith.constant 0 : i32
    return %arg0, %c0_i32, %c0_i32_0 : i32, i32, i32
  }
  func.func @transform_8(%arg0: i32) -> (i32, i32, i32) {
    %c0_i32 = arith.constant 0 : i32
    %c0_i32_0 = arith.constant 0 : i32
    %c0_i32_1 = arith.constant 0 : i32
    return %arg0, %c0_i32, %c0_i32_0 : i32, i32, i32
  }
  func.func @transform_9(%arg0: i32) -> (i32, i32, i32) {
    %c0_i32 = arith.constant 0 : i32
    %c0_i32_0 = arith.constant 0 : i32
    %c0_i32_1 = arith.constant 0 : i32
    return %arg0, %c0_i32, %c0_i32_0 : i32, i32, i32
  }
  func.func @transform_10(%arg0: i32) -> (i32, i32, i32) {
    %c0_i32 = arith.constant 0 : i32
    %c0_i32_0 = arith.constant 0 : i32
    %c0_i32_1 = arith.constant 0 : i32
    return %arg0, %c0_i32, %c0_i32_0 : i32, i32, i32
  }
  func.func @transform_11(%arg0: i32) -> (i32, i32, i32) {
    %c0_i32 = arith.constant 0 : i32
    %c0_i32_0 = arith.constant 0 : i32
    %c0_i32_1 = arith.constant 0 : i32
    return %arg0, %c0_i32, %c0_i32_0 : i32, i32, i32
  }
  func.func @transform_12(%arg0: i32) -> (i32, i32, i32) {
    %c0_i32 = arith.constant 0 : i32
    %c0_i32_0 = arith.constant 0 : i32
    %c0_i32_1 = arith.constant 0 : i32
    return %arg0, %c0_i32, %c0_i32_0 : i32, i32, i32
  }
  func.func @transform_13(%arg0: i32) -> (i32, i32) {
    %c0_i32 = arith.constant 0 : i32
    %c0_i32_0 = arith.constant 0 : i32
    %c0_i32_1 = arith.constant 0 : i32
    return %c0_i32, %c0_i32_0 : i32, i32
  }
  func.func @transform_14(%arg0: i32) -> (i32, i32) {
    %c0_i32 = arith.constant 0 : i32
    %c0_i32_0 = arith.constant 0 : i32
    %c0_i32_1 = arith.constant 0 : i32
    return %c0_i32, %c0_i32_0 : i32, i32
  }
  func.func @transform_15(%arg0: i32) -> (i32, i32) {
    %c0_i32 = arith.constant 0 : i32
    %c0_i32_0 = arith.constant 0 : i32
    %c0_i32_1 = arith.constant 0 : i32
    return %c0_i32, %c0_i32_0 : i32, i32
  }
  func.func @transform_16(%arg0: i32) -> (i32, i32) {
    %c0_i32 = arith.constant 0 : i32
    %c0_i32_0 = arith.constant 0 : i32
    %c0_i32_1 = arith.constant 0 : i32
    return %c0_i32, %c0_i32_0 : i32, i32
  }
  func.func @transform_17(%arg0: i32) -> (i32, i32) {
    %c0_i32 = arith.constant 0 : i32
    %c0_i32_0 = arith.constant 0 : i32
    %c0_i32_1 = arith.constant 0 : i32
    return %c0_i32, %c0_i32_0 : i32, i32
  }
}

</mosaic_0001>

<bundles_post_ra>
// kernel: htnet_forward.1
= control target key start
LH: loop header
LB: loop body
LE: loop exit
PB: predicated region body
PF: predicated region fallthrough
CT: control target
= control target key end

     0   :  { %s2216_s0 = inlined_call_operand.vmem [shape: f32[8,32], index: 0, kind: input, shape index: {}]   ;;  %s2217_s1 = inlined_call_operand.vmem [shape: f32[8,8], index: 1, kind: input, shape index: {}]   ;;  %s2218_s2 = inlined_call_operand.vmem [shape: f32[64,9], index: 2, kind: input, shape index: {}]   ;;  %s2219_s3 = inlined_call_operand.vmem [shape: f32[8,8,96], index: 3, kind: input, shape index: {}]   ;;  %s2220_s4 = inlined_call_operand.vmem [shape: f32[4,32,32], index: 4, kind: input, shape index: {}]   ;;  %s2221_s5 = inlined_call_operand.vmem [shape: f32[4,1,32], index: 5, kind: input, shape index: {}]   ;;  %s2222_s6 = inlined_call_operand.vmem [shape: f32[4,32,96], index: 6, kind: input, shape index: {}]   ;;  %s2223_s7 = inlined_call_operand.vmem [shape: f32[4,1,96], index: 7, kind: input, shape index: {}]   ;;  %s2224_s8 = inlined_call_operand.vmem [shape: f32[4,9,96], index: 8, kind: input, shape index: {}]   ;;  %s2225_s9 = inlined_call_operand.vmem [shape: f32[4,32,32], index: 9, kind: input, shape index: {}]   ;;  %s2226_s10 = inlined_call_operand.vmem [shape: f32[4,1,32], index: 10, kind: input, shape index: {}]   ;;  %s2227_s11 = inlined_call_operand.vmem [shape: f32[4,32,96], index: 11, kind: input, shape index: {}]   ;;  %s2228_s12 = inlined_call_operand.vmem [shape: f32[4,1,96], index: 12, kind: input, shape index: {}]   ;;  %s2229_s13 = inlined_call_operand.vmem [shape: f32[32,32], index: 13, kind: input, shape index: {}]   ;;  %s2230_s14 = inlined_call_operand.vmem [shape: f32[1,32], index: 14, kind: input, shape index: {}]   ;;  %s2231_s15 = inlined_call_operand.vmem [shape: f32[32,1], index: 15, kind: input, shape index: {}]   ;;  %s2232_s16 = inlined_call_operand.<no memory space> [shape: f32[1,1], index: 16, kind: input, shape index: {}]   ;;  %s2233_s17 = inlined_call_operand.hbm [shape: f32[1,1], index: 17, kind: output, shape index: {}]  }
   0x1   :  { %2236 = sst [smem:[#allocation9_spill]] %s2216_s0  ;;  %v22_v0 = vstv %s2232_s16 }
   0x2   :  { %2237 = sst [smem:[#allocation10_spill]] %s2217_s1  ;;  %23 = vst [vmem:[#allocation4] sm:$0x1] %v22_v0 }
   0x3   :  { %2238 = sst [smem:[#allocation11_spill]] %s2220_s4 }
   0x4   :  { %2239 = sst [smem:[#allocation12_spill]] %s2222_s6 }
   0x5   :  { %2240 = sst [smem:[#allocation13_spill]] %s2230_s14 }
   0x6   :  { %2241 = sst [smem:[#allocation14_spill]] %s2231_s15 }
   0x7   :  { %2242 = sst [smem:[#allocation15_spill]] %s2233_s17 }
   0x8   :  { %24 = vsyncpa [#allocation6], 0  ;;  %s1811_s26 = smov 0  }
   0x9 LB: > { %2243 = sst [smem:[#allocation8_spill]] %s1711_s26  ;;  %s1817_s27 = sadd.s32 4294967295, %s1711_s26   ;;  %s1711_s26 = sphi %s1811_s26, %s30_s26  }
   0xa   : > { %p1590_p0 = scmp.ge.s32.totalorder %s1711_s26, 1  ;;  %p557_p1 = scmp.lt.s32.totalorder %s1711_s26, 5 }
   0xc   : > { %p558_p2 = pnand %p1590_p0, %p557_p1 }
   0xd   : > { %p636_p3 = scmp.lt.s32.totalorder (!%p558_p2), %s1817_s27, 3  ;;  %s2244_s4 = sld [smem:[#allocation11_spill]] (!%p558_p2) }
   0xe   : > { %561 = sbr.rel (%p558_p2) target bundleno = 1319 (0x527), region = 88  ;;  %s2245_s6 = sld [smem:[#allocation12_spill]] (!%p558_p2) }
   0xf   : > { %p1601_p4 = scmp.ne.s32.totalorder (!%p558_p2), %s1817_s27, 0 }
  0x13   : > { %s1823_s16 = scalar_select %p636_p3, %s1817_s27, 3 }
  0x15   : > { %s1627_s28 = sshll.u32 %s1823_s16, 5  ;;  %s1629_s26 = sshll.u32 %s1823_s16, 4 }
  0x16   : > { %s640_s1 = scalar_lea.vmem %s2244_s4, %s1627_s28  ;;  %s1836_s22 = scalar_lea.vmem %s2245_s6, %s1627_s28 }
  0x17   : > { %s656_s15 = scalar_lea.vmem %s2224_s8, %s1629_s26  ;;  %s1849_s30 = scalar_lea.vmem %s2225_s9, %s1627_s28 }
  0x18   : > { %s664_s20 = scalar_lea.vmem %s2226_s10, %s1823_s16  ;;  %s1858_s6 = scalar_lea.vmem %s2227_s11, %s1627_s28 }
  0x19   : > { %s672_s25 = scalar_lea.vmem %s2228_s12, %s1823_s16  ;;  %676 = sbr.rel (%p1601_p4) target bundleno = 34 (0x22), region = 92 }
  0x1a   : > { %s2246_s26 = sld [smem:[#allocation9_spill]] (!%p1601_p4) }
  0x1e   : > { %vm678_vm0 = vcmask 261120   ;;  %vm680_vm1 = vcmask 785408   ;;  %v1713_v2 = vmov 0.0  }
  0x1f   : > { %681 = vst.msk [vmem:[#allocation3] sm:$0xff] %vm680_vm1, %v1713_v2 }
  0x20   : > { %v677_v1 = vld [vmem:[%s2246_s26] sm:$0xff] }
  0x21   : > { %679 = vst.msk [vmem:[#allocation2] sm:$0xff] %vm678_vm0, %v677_v1 }
  0x22 PF: > { %v696_v3 = vld [vmem:[%s640_s1 + $0x18] sm:$0xff]  ;;  %v695_v4 = vld [vmem:[%s640_s1 + $0x10] sm:$0xff]  ;;  %vm806_vm2 = vcmask 1040384   ;;  %v780_v5 = vld [vmem:[%s656_s15 + $0x8] sm:$0x1]  ;;  %vm701_vm3 = vcmask 261120   ;;  %s2247_s26 = scalar_lea.vmem %s2221_s5, %s1823_s16 }
  0x23   : > { %717 = vmatpush.msra.mxu3 %v696_v3  ;;  %v694_v6 = vld [vmem:[%s640_s1 + $0x8] sm:$0xff]  ;;  %1633 = vmatpush.msk.msra.mxu2 %vm806_vm2, %v780_v5  ;;  %v693_v7 = vld [vmem:[%s640_s1] sm:$0xff]  ;;  %vm781_vm4 = vcmask 72704   ;;  %v743_v13 = vld [vmem:[%s1836_s22 + $0x18] sm:$0xff]  ;;  %vm859_vm7 = vcmask 523520   ;;  %s1714_s19 = smov 32  }
  0x24   : > { %1605 = vmatpush.msk.msra.mxu0 %vm806_vm2, %v780_v5  ;;  %v779_v9 = vld [vmem:[%s656_s15] sm:$0xff]  ;;  %v776_v11 = vld [vmem:[%s2218_s2 + $0x28] sm:$0xff]  ;;  %v742_v14 = vld [vmem:[%s1836_s22 + $0x10] sm:$0xff]  ;;  %763 = vmatpush.msra.mxu1 %v743_v13  ;;  %s2248_s15 = scalar_lea.vmem %s2223_s7, %s1823_s16  ;;  %s1715_s21 = smov 64   ;;  %vm1166_vm8 = vcmask 1041409   ;;  %vm1168_vm9 = vcmask 1042434  }
  0x25   : > { %718 = vmatpush.msra.mxu3 %v695_v4  ;;  %1635 = vmatpush.msra.mxu2 %v779_v9  ;;  %v775_v10 = vld [vmem:[%s2218_s2 + $0x20] sm:$0xff]  ;;  %v741_v15 = vld [vmem:[%s1836_s22 + $0x8] sm:$0xff]  ;;  %v777_v18 = vld [vmem:[%s2218_s2 + $0x30] sm:$0xff]  ;;  %s1716_s23 = smov 96   ;;  %vm1170_vm10 = vcmask 1043459   ;;  %vm1172_vm11 = vcmask 1044484  }
  0x26   : > { %825 = vmatpush.msra.mxu0 %v779_v9  ;;  %1610 = vmatmul.msk.f32.vlgmr.msra.gmra.mxu2 %vm781_vm4, %v775_v10  ;;  %v771_v12 = vld [vmem:[%s2218_s2] sm:$0xff]  ;;  %v772_v17 = vld [vmem:[%s2218_s2 + $0x8] sm:$0xff]  ;;  %v778_v19 = vld [vmem:[%s2218_s2 + $0x38] sm:$0xff]  ;;  %vm1174_vm12 = vcmask 1045509   ;;  %vm1176_vm13 = vcmask 1046534   ;;  %vm1178_vm14 = vcmask 1047559  }
  0x27   : > { %719 = vmatpush.msra.mxu3 %v694_v6  ;;  %1606 = vmatmul.msk.f32.vlgmr.msra.gmra.mxu0 %vm781_vm4, %v771_v12  ;;  %v740_v16 = vld [vmem:[%s1836_s22] sm:$0xff]  ;;  %v773_v21 = vld [vmem:[%s2218_s2 + $0x10] sm:$0xff]  ;;  %v774_v37 = vld [vmem:[%s2218_s2 + $0x18] sm:$0xff]  ;;  %vm980_vm15 = vcmask 523264   ;;  %vm1037_vm0 = vcmask 785408   ;;  %vm1295_vm1 = vcmask 64512  }
  0x28   : > { %v1870_v8 = vld [vmem:[#allocation2] sm:$0xff]  ;;  %764 = vmatpush.msra.mxu1 %v742_v14  ;;  %p1619_p5 = scmp.ne.s32.totalorder %s1817_s27, 3 }
  0x29   : > { %720 = vmatpush.msra.mxu3 %v693_v7  ;;  %v1655_v20 = vld [vmem:[%s2247_s26] ss:$0 sm:$0xff]  ;;  %s2249_s26 = sld [smem:[#allocation10_spill]] }
  0x2a   : > { %1602 = vmatmul.msk.f32.vlgmr.msra.gmra.mxu3 %vm701_vm3, %v1870_v8  ;;  %765 = vmatpush.msra.mxu1 %v741_v15  ;;  %v1656_v43 = vld [vmem:[%s2248_s15] ss:$0 sm:$0xff] }
  0x2c   : > { %766 = vmatpush.msra.mxu1 %v740_v16 }
  0x2e   : > { %1611 = vmatmul.msk.f32.gmra.mxu2 %vm781_vm4, %v776_v11  ;;  %1632 = vmatpush.msk.msrb.mxu1 %vm806_vm2, %v780_v5 }
  0x2f   : > { %1607 = vmatmul.msk.f32.gmra.mxu0 %vm781_vm4, %v772_v17 }
  0x30   : > { %1634 = vmatpush.msrb.mxu1 %v779_v9 }
  0x36   : > { %1612 = vmatmul.msk.f32.gmra.mxu2 %vm781_vm4, %v777_v18 }
  0x37   : > { %1608 = vmatmul.msk.f32.gmra.mxu0 %vm781_vm4, %v773_v21 }
  0x3e   : > { %1613 = vmatmul.msk.f32.gmra.mxu2 %vm781_vm4, %v778_v19 }
  0xa4   : > { %v827_v39 = vpop.f32.mrf.mxu0 }
  0xa9   : > { %v839_v38 = vpop.f32.mrf.mxu2 }
  0xac   : > { %v830_v41 = vpop.f32.mrf.mxu0 }
  0xad   : > { %v722_v22 = vpop.f32.mrf.mxu3 }
  0xae   : > { %v723_v23 = vadd.f32 %v1655_v20, %v722_v22 }
  0xb0   : > { %v726_v24 = vmin.f32 %v723_v23, 20.0  ;;  %vm725_vm6 = vcmp.gt.f32.partialorder %v723_v23, 20.0 }
  0xb1   : > { %v842_v40 = vpop.f32.mrf.mxu2 }
  0xb2   : > { %v727_v25 = vmul.f32 1.442695, %v726_v24 }
  0xb4   : > { %1659 = vpow2.f32 %v727_v25  ;;  %v833_v44 = vpop.f32.mrf.mxu0 }
  0xb9   : > { %v845_v42 = vpop.f32.mrf.mxu2 }
  0xba   : > { %v1660_v26 = vpop.eup %1659 }
  0xbb   : > { %v729_v27 = vadd.f32 1.0, %v1660_v26  ;;  %v732_v28 = vmul.f32 -0.5, %v1660_v26  ;;  %v735_v30 = vand.u32 2147483647, %v1660_v26 }
  0xbd   : > { %1661 = vlog2.f32 %v729_v27  ;;  %v733_v29 = vadd.f32 1.0, %v732_v28  ;;  %vm736_vm5 = vcmp.lt.f32.partialorder %v735_v30, 0.0004427343 }
  0xbf   : > { %v734_v33 = vmul.f32 %v1660_v26, %v733_v29 }
  0xc1   : > { %v848_v46 = vpop.f32.mrf.mxu2 }
  0xc3   : > { %v1662_v31 = vpop.eup %1661 }
  0xc4   : > { %v731_v32 = vmul.f32 0.6931472, %v1662_v31 }
  0xc6   : > { %v737_v34 = vsel %vm736_vm5, %v734_v33, %v731_v32 }
  0xc7   : > { %v738_v35 = vsel %vm725_vm6, %v723_v23, %v737_v34 }
  0xc8   : > { %v1603_v36 = vadd.f32 -0.6931472, %v738_v35 }
  0xca   : > { %1604 = vmatmul.msk.f32.vlgmr.msra.gmra.mxu1 %vm701_vm3, %v1603_v36 }
  0xd2   : > { %1609 = vmatmul.msk.f32.vlgmr.msrb.gmra.mxu1 %vm781_vm4, %v774_v37 }
 0x147   : > { %v768_v45 = vpop.f32.mrf.mxu1 }
 0x148   : > { %v769_v47 = vadd.f32 %v1656_v43, %v768_v45 }
 0x14a   : > { %v1922_v48 = vmul.f32 %v833_v44, %v769_v47  ;;  %v1924_v49 = vmul.f32 %v848_v46, %v769_v47  ;;  %v1926_v50 = vmul.f32 %v830_v41, %v769_v47  ;;  %v1928_v51 = vmul.f32 %v827_v39, %v769_v47 }
 0x14b   : > { %v1930_v52 = vmul.f32 %v839_v38, %v769_v47  ;;  %v1932_v53 = vmul.f32 %v842_v40, %v769_v47  ;;  %v1934_v54 = vmul.f32 %v845_v42, %v769_v47 }
 0x14c   : > { %v874_v55 = vsel %vm859_vm7, %v1922_v48, 0.0  ;;  %926 = vrot.lane.b32.xlu1 %v1926_v50, %s1714_s19  ;;  %948 = vrot.lane.b32.xlu2 %v1928_v51, %s1715_s21  ;;  %v860_v56 = vsel %vm859_vm7, %v1928_v51, 0.0  ;;  %v867_v57 = vsel %vm859_vm7, %v1926_v50, 0.0  ;;  %v909_v58 = vsel %vm859_vm7, %v1924_v49, 0.0 }
 0x14d   : > { %v875_v59 = vrot.slane %v874_v55, 4  ;;  %v861_v60 = vrot.slane %v860_v56, 4  ;;  %v868_v61 = vrot.slane %v867_v57, 4  ;;  %v888_v62 = vsel %vm859_vm7, %v1930_v52, 0.0 }
 0x14e   : > { %v889_v63 = vrot.slane %v888_v62, 4  ;;  %v895_v0 = vsel %vm859_vm7, %v1932_v53, 0.0  ;;  %v902_v1 = vsel %vm859_vm7, %v1934_v54, 0.0  ;;  %v910_v2 = vrot.slane %v909_v58, 4 }
 0x14f   : > { %v876_v3 = vadd.f32 %v875_v59, %v874_v55  ;;  %v836_v4 = vpop.f32.mrf.mxu1  ;;  %v862_v5 = vadd.f32 %v861_v60, %v860_v56  ;;  %v869_v6 = vadd.f32 %v868_v61, %v867_v57  ;;  %v896_v7 = vrot.slane %v895_v0, 4 }
 0x150   : > { %v1954_v9 = vmul.f32 %v836_v4, %v769_v47  ;;  %v890_v10 = vadd.f32 %v889_v63, %v888_v62  ;;  %v903_v11 = vrot.slane %v902_v1, 4  ;;  %v911_v12 = vadd.f32 %v910_v2, %v909_v58  ;;  %v1220_v2 = vld [vmem:[%s1849_s30 + $0x10] sm:$0xff]  ;;  %v1218_v4 = vld [vmem:[%s1849_s30] sm:$0xff] }
 0x151   : > { %v863_v13 = vrot.slane %v862_v5, 2  ;;  %v870_v14 = vrot.slane %v869_v6, 2  ;;  %v877_v15 = vrot.slane %v876_v3, 2  ;;  %v897_v16 = vadd.f32 %v896_v7, %v895_v0  ;;  %v1221_v0 = vld [vmem:[%s1849_s30 + $0x18] sm:$0xff] }
 0x152   : > { %v881_v17 = vsel %vm859_vm7, %v1954_v9, 0.0  ;;  %v891_v18 = vrot.slane %v890_v10, 2  ;;  %v904_v19 = vadd.f32 %v903_v11, %v902_v1  ;;  %v912_v29 = vrot.slane %v911_v12, 2  ;;  %1241 = vmatpush.msrb.mxu3 %v1221_v0 }
 0x153   : > { %v882_v20 = vrot.slane %v881_v17, 4  ;;  %v864_v21 = vadd.f32 %v863_v13, %v862_v5  ;;  %v871_v22 = vadd.f32 %v870_v14, %v869_v6  ;;  %v878_v23 = vadd.f32 %v877_v15, %v876_v3  ;;  %v1219_v3 = vld [vmem:[%s1849_s30 + $0x8] sm:$0xff]  ;;  %s2250_s30 = sld [smem:[#allocation14_spill]] (!%p1619_p5) }
 0x154   : > { %928 = vrot.lane.b32.xlu1 %v1922_v48, %s1714_s19  ;;  %950 = vrot.lane.b32.xlu2 %v1926_v50, %s1715_s21  ;;  %v898_v24 = vrot.slane %v897_v16, 2  ;;  %v905_v25 = vrot.slane %v904_v19, 2  ;;  %v892_v31 = vadd.f32 %v891_v18, %v890_v10  ;;  %v913_v38 = vadd.f32 %v912_v29, %v911_v12 }
 0x155   : > { %v865_v26 = vrot.slane %v864_v21, 1  ;;  %v872_v27 = vrot.slane %v871_v22, 1  ;;  %v883_v28 = vadd.f32 %v882_v20, %v881_v17  ;;  %v879_v30 = vrot.slane %v878_v23, 1  ;;  %1242 = vmatpush.msrb.mxu3 %v1220_v2 }
 0x156   : > { %v899_v35 = vadd.f32 %v898_v24, %v897_v16  ;;  %v906_v36 = vadd.f32 %v905_v25, %v904_v19  ;;  %v893_v40 = vrot.slane %v892_v31, 1  ;;  %v914_v46 = vrot.slane %v913_v38, 1  ;;  %v2027_v24 = vld [vmem:[#allocation3] sm:$0xff] }
 0x157   : > { %v866_v32 = vadd.f32 %v865_v26, %v864_v21  ;;  %v873_v33 = vadd.f32 %v872_v27, %v871_v22  ;;  %v884_v34 = vrot.slane %v883_v28, 2  ;;  %v880_v39 = vadd.f32 %v879_v30, %v878_v23  ;;  %1243 = vmatpush.msrb.mxu3 %v1219_v3 }
 0x158   : > { %v900_v42 = vrot.slane %v899_v35, 1  ;;  %v907_v44 = vrot.slane %v906_v36, 1  ;;  %v894_v47 = vadd.f32 %v893_v40, %v892_v31  ;;  %v915_v60 = vadd.f32 %v914_v46, %v913_v38 }
 0x159   : > { %v885_v37 = vadd.f32 %v884_v34, %v883_v28  ;;  %v1167_v43 = vsel %vm1166_vm8, %v873_v33, %v866_v32  ;;  %1244 = vmatpush.msrb.mxu3 %v1218_v4 }
 0x15a   : > { %v1169_v55 = vsel %vm1168_vm9, %v880_v39, %v1167_v43  ;;  %v901_v56 = vadd.f32 %v900_v42, %v899_v35  ;;  %v908_v58 = vadd.f32 %v907_v44, %v906_v36  ;;  %v685_v42 = vld [vmem:[%s2219_s3] sm:$0xff] }
 0x15b   : > { %v886_v41 = vrot.slane %v885_v37, 1 }
 0x15c   : > { %952 = vrot.lane.b32.xlu1 %v1922_v48, %s1715_s21  ;;  %989 = vrot.lane.b32.xlu2 %v1928_v51, %s1716_s23 }
 0x15d   : > { %v887_v45 = vadd.f32 %v886_v41, %v885_v37 }
 0x15f   : > { %v1171_v57 = vsel %vm1170_vm10, %v887_v45, %v1169_v55 }
 0x160   : > { %v1173_v59 = vsel %vm1172_vm11, %v894_v47, %v1171_v57 }
 0x161   : > { %v1175_v61 = vsel %vm1174_vm12, %v901_v56, %v1173_v59 }
 0x162   : > { %v1177_v62 = vsel %vm1176_vm13, %v908_v58, %v1175_v61 }
 0x163   : > { %v1179_v63 = vsel %vm1178_vm14, %v915_v60, %v1177_v62 }
 0x164   : > { %932 = vrot.lane.b32.xlu1 %v1930_v52, %s1714_s19  ;;  %954 = vrot.lane.b32.xlu2 %v1954_v9, %s1715_s21 }
 0x165   : > { %1180 = vrot.lane.b32.xlu0 %v1179_v63, %s1716_s23 }
 0x16c   : > { %934 = vrot.lane.b32.xlu1 %v1932_v53, %s1714_s19  ;;  %956 = vrot.lane.b32.xlu2 %v1930_v52, %s1715_s21 }
 0x16d   : > { %924 = vrot.lane.b32.xlu0 %v1928_v51, %s1714_s19 }
 0x174   : > { %936 = vrot.lane.b32.xlu1 %v1934_v54, %s1714_s19  ;;  %958 = vrot.lane.b32.xlu2 %v1932_v53, %s1715_s21 }
 0x175   : > { %930 = vrot.lane.b32.xlu0 %v1954_v9, %s1714_s19 }
 0x17c   : > { %938 = vrot.lane.b32.xlu1 %v1924_v49, %s1714_s19  ;;  %960 = vrot.lane.b32.xlu2 %v1934_v54, %s1715_s21 }
 0x17d   : > { %991 = vrot.lane.b32.xlu0 %v1926_v50, %s1716_s23 }
 0x184   : > { %962 = vrot.lane.b32.xlu1 %v1924_v49, %s1715_s21  ;;  %1001 = vrot.lane.b32.xlu2 %v1934_v54, %s1716_s23 }
 0x185   : > { %993 = vrot.lane.b32.xlu0 %v1922_v48, %s1716_s23 }
 0x18d   : > { %995 = vrot.lane.b32.xlu0 %v1954_v9, %s1716_s23 }
 0x195   : > { %997 = vrot.lane.b32.xlu0 %v1930_v52, %s1716_s23 }
 0x19d   : > { %999 = vrot.lane.b32.xlu0 %v1932_v53, %s1716_s23 }
 0x1a5   : > { %1003 = vrot.lane.b32.xlu0 %v1924_v49, %s1716_s23 }
 0x1a6   : > { %v949_v1 = vpop.permute.xlu2 %948 }
 0x1ae   : > { %v951_v6 = vpop.permute.xlu2 %950 }
 0x1b6   : > { %v990_v10 = vpop.permute.xlu2 %989 }
 0x1b7   : > { %v1013_v35 = vsel %vm701_vm3, %v949_v1, %v990_v10 }
 0x1b8   : > { %v1021_v43 = vsel %vm980_vm15, %v1013_v35, %v1928_v51 }
 0x1b9   : > { %v1094_v58 = vmul.f32 %v1021_v43, %v685_v42 }
 0x1be   : > { %v927_v5 = vpop.permute.xlu1 %926  ;;  %v955_v12 = vpop.permute.xlu2 %954 }
 0x1bf   : > { %v973_v22 = vsel %vm701_vm3, %v1926_v50, %v927_v5 }
 0x1c0   : > { %v982_v25 = vsel %vm980_vm15, %v973_v22, %v951_v6 }
 0x1c1   : > { %v1030_v28 = vmul.f32 %v982_v25, %v2027_v24 }
 0x1c3   : > { %v1045_v36 = vsel %vm1037_vm0, %v1030_v28, 0.0 }
 0x1c4   : > { %v1046_v44 = vrot.slane %v1045_v36, 4 }
 0x1c6   : > { %v929_v7 = vpop.permute.xlu1 %928  ;;  %v2019_v16 = vpop.permute.xlu2 %956  ;;  %v1047_v61 = vadd.f32 %v1046_v44, %v1045_v36 }
 0x1c7   : > { %v974_v32 = vsel %vm701_vm3, %v1922_v48, %v929_v7  ;;  %v687_v7 = vld [vmem:[%s2219_s3 + $0x10] sm:$0xff] }
 0x1ce   : > { %v953_v11 = vpop.permute.xlu1 %952  ;;  %v2021_v20 = vpop.permute.xlu2 %958 }
 0x1cf   : > { %v983_v37 = vsel %vm980_vm15, %v974_v32, %v953_v11 }
 0x1d0   : > { %v1031_v45 = vmul.f32 %v983_v37, %v2027_v24 }
 0x1d6   : > { %v933_v14 = vpop.permute.xlu1 %932  ;;  %v961_v26 = vpop.permute.xlu2 %960 }
 0x1d7   : > { %v1181_v13 = vpop.permute.xlu0 %1180  ;;  %v976_v30 = vsel %vm701_vm3, %v1930_v52, %v933_v14 }
 0x1d8   : > { %v2015_v15 = vadd.f32 %v1181_v13, %v1870_v8  ;;  %v985_v39 = vsel %vm980_vm15, %v976_v30, %v2019_v16  ;;  %v1102_v13 = vsel %vm1037_vm0, %v1094_v58, 0.0 }
 0x1d9   : > { %v1033_v46 = vmul.f32 %v985_v39, %v2027_v24 }
 0x1da   : > { %1614 = vmatmul.msk.f32.vlgmr.msrb.gmra.mxu3 %vm701_vm3, %v2015_v15 }
 0x1db   : > { %v1066_v62 = vsel %vm1037_vm0, %v1033_v46, 0.0 }
 0x1dc   : > { %v1067_v22 = vrot.slane %v1066_v62, 4 }
 0x1de   : > { %v935_v18 = vpop.permute.xlu1 %934  ;;  %v1002_v55 = vpop.permute.xlu2 %1001 }
 0x1df   : > { %v925_v17 = vpop.permute.xlu0 %924  ;;  %v977_v47 = vsel %vm701_vm3, %v1932_v53, %v935_v18  ;;  %v1019_v0 = vsel %vm701_vm3, %v961_v26, %v1002_v55 }
 0x1e0   : > { %v972_v23 = vsel %vm701_vm3, %v1928_v51, %v925_v17  ;;  %v1052_v51 = vsel %vm1037_vm0, %v1031_v45, 0.0  ;;  %v986_v63 = vsel %vm980_vm15, %v977_v47, %v2021_v20  ;;  %v688_v17 = vld [vmem:[%s2219_s3 + $0x18] sm:$0xff] }
 0x1e1   : > { %v981_v27 = vsel %vm980_vm15, %v972_v23, %v949_v1  ;;  %v686_v1 = vld [vmem:[%s2219_s3 + $0x8] sm:$0xff]  ;;  %v1053_v14 = vrot.slane %v1052_v51, 4 }
 0x1e2   : > { %v1029_v31 = vmul.f32 %v981_v27, %v2027_v24  ;;  %v691_v27 = vld [vmem:[%s2219_s3 + $0x30] sm:$0xff] }
 0x1e3   : > { %v1054_v32 = vadd.f32 %v1053_v14, %v1052_v51 }
 0x1e4   : > { %v1038_v40 = vsel %vm1037_vm0, %v1029_v31, 0.0  ;;  %v1103_v31 = vrot.slane %v1102_v13, 4 }
 0x1e5   : > { %v1039_v56 = vrot.slane %v1038_v40, 4  ;;  %v1055_v46 = vrot.slane %v1054_v32, 2 }
 0x1e6   : > { %v937_v21 = vpop.permute.xlu1 %936  ;;  %v1104_v45 = vadd.f32 %v1103_v31, %v1102_v13 }
 0x1e7   : > { %v931_v19 = vpop.permute.xlu0 %930  ;;  %v1040_v4 = vadd.f32 %v1039_v56, %v1038_v40 }
 0x1e8   : > { %v975_v29 = vsel %vm701_vm3, %v1954_v9, %v931_v19  ;;  %v1048_v19 = vrot.slane %v1047_v61, 2 }
 0x1e9   : > { %v984_v33 = vsel %vm980_vm15, %v975_v29, %v955_v12 }
 0x1ea   : > { %v1032_v41 = vmul.f32 %v984_v33, %v2027_v24  ;;  %v1049_v33 = vadd.f32 %v1048_v19, %v1047_v61 }
 0x1ec   : > { %v1059_v59 = vsel %vm1037_vm0, %v1032_v41, 0.0 }
 0x1ed   : > { %v1060_v5 = vrot.slane %v1059_v59, 4 }
 0x1ee   : > { %v939_v34 = vpop.permute.xlu1 %938 }
 0x1ef   : > { %v992_v8 = vpop.permute.xlu0 %991  ;;  %v1061_v29 = vadd.f32 %v1060_v5, %v1059_v59  ;;  %v1105_v5 = vrot.slane %v1104_v45, 2 }
 0x1f0   : > { %v1014_v57 = vsel %vm701_vm3, %v951_v6, %v992_v8  ;;  %v1027_v8 = vsel %vm980_vm15, %v1019_v0, %v1934_v54 }
 0x1f1   : > { %v1022_v2 = vsel %vm980_vm15, %v1014_v57, %v1926_v50  ;;  %v978_v50 = vsel %vm701_vm3, %v1934_v54, %v937_v21  ;;  %v1100_v37 = vmul.f32 %v1027_v8, %v691_v27  ;;  %v1062_v42 = vrot.slane %v1061_v29, 2 }
 0x1f2   : > { %v1095_v23 = vmul.f32 %v1022_v2, %v686_v1  ;;  %v987_v28 = vsel %vm980_vm15, %v978_v50, %v961_v26  ;;  %v689_v26 = vld [vmem:[%s2219_s3 + $0x20] sm:$0xff]  ;;  %v1056_v2 = vadd.f32 %v1055_v46, %v1054_v32 }
 0x1f4   : > { %v1109_v35 = vsel %vm1037_vm0, %v1095_v23, 0.0  ;;  %v1057_v8 = vrot.slane %v1056_v2, 1 }
 0x1f5   : > { %v1110_v47 = vrot.slane %v1109_v35, 4 }
 0x1f6   : > { %v2069_v6 = vpop.permute.xlu1 %962 }
 0x1f7   : > { %v994_v38 = vpop.permute.xlu0 %993 }
 0x1f8   : > { %v1015_v60 = vsel %vm701_vm3, %v953_v11, %v994_v38  ;;  %v1035_v38 = vmul.f32 %v987_v28, %v2027_v24 }
 0x1f9   : > { %v1023_v10 = vsel %vm980_vm15, %v1015_v60, %v1922_v48  ;;  %v979_v48 = vsel %vm701_vm3, %v1924_v49, %v939_v34  ;;  %v1068_v34 = vadd.f32 %v1067_v22, %v1066_v62  ;;  %v1050_v60 = vrot.slane %v1049_v33, 1 }
 0x1fa   : > { %v988_v21 = vsel %vm980_vm15, %v979_v48, %v2069_v6  ;;  %v1096_v25 = vmul.f32 %v1023_v10, %v687_v7  ;;  %v1080_v51 = vsel %vm1037_vm0, %v1035_v38, 0.0 }
 0x1fb   : > { %v1036_v54 = vmul.f32 %v988_v21, %v2027_v24  ;;  %v1069_v61 = vrot.slane %v1068_v34, 2  ;;  %v1081_v10 = vrot.slane %v1080_v51, 4  ;;  %v1051_v13 = vadd.f32 %v1050_v60, %v1049_v33 }
 0x1fc   : > { %v1116_v39 = vsel %vm1037_vm0, %v1096_v25, 0.0 }
 0x1fd   : > { %v1087_v57 = vsel %vm1037_vm0, %v1036_v54, 0.0  ;;  %v1117_v58 = vrot.slane %v1116_v39, 4  ;;  %v1070_v14 = vadd.f32 %v1069_v61, %v1068_v34  ;;  %v1082_v28 = vadd.f32 %v1081_v10, %v1080_v51 }
 0x1ff   : > { %v996_v3 = vpop.permute.xlu0 %995  ;;  %v1071_v31 = vrot.slane %v1070_v14, 1 }
 0x200   : > { %v1016_v11 = vsel %vm701_vm3, %v955_v12, %v996_v3  ;;  %v1034_v12 = vmul.f32 %v986_v63, %v2027_v24  ;;  %v1144_v63 = vsel %vm1037_vm0, %v1100_v37, 0.0  ;;  %v1111_v3 = vadd.f32 %v1110_v47, %v1109_v35  ;;  %v692_v47 = vld [vmem:[%s2219_s3 + $0x38] sm:$0xff] }
 0x201   : > { %v1024_v18 = vsel %vm980_vm15, %v1016_v11, %v1954_v9  ;;  %v1041_v9 = vrot.slane %v1040_v4, 2  ;;  %v1118_v11 = vadd.f32 %v1117_v58, %v1116_v39  ;;  %v1145_v50 = vrot.slane %v1144_v63, 4 }
 0x202   : > { %v1097_v30 = vmul.f32 %v1024_v18, %v688_v17  ;;  %v1073_v36 = vsel %vm1037_vm0, %v1034_v12, 0.0  ;;  %v690_v18 = vld [vmem:[%s2219_s3 + $0x28] sm:$0xff]  ;;  %v1112_v21 = vrot.slane %v1111_v3, 2 }
 0x203   : > { %v1042_v41 = vadd.f32 %v1041_v9, %v1040_v4  ;;  %v1074_v56 = vrot.slane %v1073_v36, 4  ;;  %v1088_v4 = vrot.slane %v1087_v57, 4  ;;  %v1146_v32 = vadd.f32 %v1145_v50, %v1144_v63 }
 0x204   : > { %v1123_v43 = vsel %vm1037_vm0, %v1097_v30, 0.0  ;;  %v1113_v37 = vadd.f32 %v1112_v21, %v1111_v3 }
 0x205   : > { %v1124_v62 = vrot.slane %v1123_v43, 4  ;;  %v1043_v0 = vrot.slane %v1042_v41, 1  ;;  %v1075_v7 = vadd.f32 %v1074_v56, %v1073_v36  ;;  %v1089_v25 = vadd.f32 %v1088_v4, %v1087_v57 }
 0x206   : > { %v1147_v56 = vrot.slane %v1146_v32, 2 }
 0x207   : > { %v998_v40 = vpop.permute.xlu0 %997  ;;  %v1125_v17 = vadd.f32 %v1124_v62, %v1123_v43  ;;  %v1044_v22 = vadd.f32 %v1043_v0, %v1042_v41  ;;  %v1076_v9 = vrot.slane %v1075_v7, 2  ;;  %v1090_v38 = vrot.slane %v1089_v25, 2 }
 0x208   : > { %v1017_v44 = vsel %vm701_vm3, %v2019_v16, %v998_v40  ;;  %v1063_v16 = vadd.f32 %v1062_v42, %v1061_v29  ;;  %v1119_v29 = vrot.slane %v1118_v11, 2  ;;  %v1072_v42 = vadd.f32 %v1071_v31, %v1070_v14 }
 0x209   : > { %v1025_v55 = vsel %vm980_vm15, %v1017_v44, %v1930_v52  ;;  %v1126_v33 = vrot.slane %v1125_v17, 2  ;;  %v1192_v34 = vsel %vm1166_vm8, %v1051_v13, %v1044_v22  ;;  %v1077_v40 = vadd.f32 %v1076_v9, %v1075_v7 }
 0x20a   : > { %v1098_v59 = vmul.f32 %v1025_v55, %v689_v26  ;;  %v1064_v48 = vrot.slane %v1063_v16, 1  ;;  %v1106_v26 = vadd.f32 %v1105_v5, %v1104_v45  ;;  %v1120_v41 = vadd.f32 %v1119_v29, %v1118_v11 }
 0x20b   : > { %v1127_v44 = vadd.f32 %v1126_v33, %v1125_v17  ;;  %v1091_v60 = vadd.f32 %v1090_v38, %v1089_v25  ;;  %v1078_v62 = vrot.slane %v1077_v40, 1  ;;  %v1148_v14 = vadd.f32 %v1147_v56, %v1146_v32 }
 0x20c   : > { %v1130_v1 = vsel %vm1037_vm0, %v1098_v59, 0.0  ;;  %v1065_v35 = vadd.f32 %v1064_v48, %v1063_v16  ;;  %v1114_v59 = vrot.slane %v1113_v37, 1  ;;  %v1121_v0 = vrot.slane %v1120_v41, 1 }
 0x20d   : > { %v1131_v52 = vrot.slane %v1130_v1, 4  ;;  %v1079_v13 = vadd.f32 %v1078_v62, %v1077_v40  ;;  %v1149_v25 = vrot.slane %v1148_v14, 1  ;;  %v1266_v40 = vld [vmem:[%s1858_s6 + $0x10] sm:$0xff] }
 0x20e   : > { %v1115_v7 = vadd.f32 %v1114_v59, %v1113_v37 }
 0x20f   : > { %v1000_v19 = vpop.permute.xlu0 %999  ;;  %v1132_v23 = vadd.f32 %v1131_v52, %v1130_v1  ;;  %v1107_v1 = vrot.slane %v1106_v26, 1 }
 0x210   : > { %v1018_v12 = vsel %vm701_vm3, %v2021_v20, %v1000_v19  ;;  %v1058_v20 = vadd.f32 %v1057_v8, %v1056_v2  ;;  %v1128_v2 = vrot.slane %v1127_v44, 1 }
 0x211   : > { %v1026_v27 = vsel %vm980_vm15, %v1018_v12, %v1932_v53  ;;  %v1133_v54 = vrot.slane %v1132_v23, 2  ;;  %v1083_v53 = vrot.slane %v1082_v28, 2  ;;  %v1108_v17 = vadd.f32 %v1107_v1, %v1106_v26  ;;  %v1267_v26 = vld [vmem:[%s1858_s6 + $0x18] sm:$0xff] }
 0x212   : > { %v1099_v30 = vmul.f32 %v1026_v27, %v690_v18  ;;  %v1193_v43 = vsel %vm1168_vm9, %v1058_v20, %v1192_v34  ;;  %v1129_v18 = vadd.f32 %v1128_v2, %v1127_v44  ;;  %1287 = vmatpush.msrb.mxu0 %v1267_v26 }
 0x213   : > { %v1194_v57 = vsel %vm1170_vm10, %v1065_v35, %v1193_v43  ;;  %v1134_v58 = vadd.f32 %v1133_v54, %v1132_v23  ;;  %v1084_v63 = vadd.f32 %v1083_v53, %v1082_v28  ;;  %v1209_v23 = vsel %vm1166_vm8, %v1115_v7, %v1108_v17  ;;  %v1264_v53 = vld [vmem:[%s1858_s6] sm:$0xff] }
 0x214   : > { %v1137_v36 = vsel %vm1037_vm0, %v1099_v30, 0.0  ;;  %v1195_v5 = vsel %vm1172_vm11, %v1072_v42, %v1194_v57  ;;  %v1150_v35 = vadd.f32 %v1149_v25, %v1148_v14  ;;  %1288 = vmatpush.msrb.mxu0 %v1266_v40 }
 0x215   : > { %v1138_v39 = vrot.slane %v1137_v36, 4  ;;  %v1135_v4 = vrot.slane %v1134_v58, 1  ;;  %v1085_v50 = vrot.slane %v1084_v63, 1  ;;  %v1196_v48 = vsel %vm1174_vm12, %v1079_v13, %v1195_v5 }
 0x217   : > { %v1139_v46 = vadd.f32 %v1138_v39, %v1137_v36  ;;  %v1004_v55 = vpop.permute.xlu0 %1003  ;;  %v1136_v22 = vadd.f32 %v1135_v4, %v1134_v58  ;;  %v1086_v27 = vadd.f32 %v1085_v50, %v1084_v63  ;;  %v684_v39 = vld [vmem:[%s2249_s26] sm:$0xff] }
 0x218   : > { %v1020_v45 = vsel %vm701_vm3, %v2069_v6, %v1004_v55  ;;  %v1092_v6 = vrot.slane %v1091_v60, 1 }
 0x219   : > { %v1140_v61 = vrot.slane %v1139_v46, 2  ;;  %v1028_v51 = vsel %vm980_vm15, %v1020_v45, %v1924_v49  ;;  %v1122_v49 = vadd.f32 %v1121_v0, %v1120_v41  ;;  %v1197_v30 = vsel %vm1176_vm13, %v1086_v27, %v1196_v48  ;;  %v1657_v41 = vld [vmem:[%s664_s20] ss:$0 sm:$0xff]  ;;  %s2251_s20 = sld [smem:[#allocation13_spill]] (!%p1619_p5) }
 0x21a   : > { %v1101_v16 = vmul.f32 %v1028_v51, %v692_v47  ;;  %v1093_v12 = vadd.f32 %v1092_v6, %v1091_v60 }
 0x21b   : > { %v1141_v3 = vadd.f32 %v1140_v61, %v1139_v46  ;;  %v1210_v9 = vsel %vm1168_vm9, %v1122_v49, %v1209_v23 }
 0x21c   : > { %v1151_v52 = vsel %vm1037_vm0, %v1101_v16, 0.0  ;;  %v1211_v28 = vsel %vm1170_vm10, %v1129_v18, %v1210_v9  ;;  %v1198_v33 = vsel %vm1178_vm14, %v1093_v12, %v1197_v30  ;;  %v1658_v16 = vld [vmem:[%s672_s25] ss:$0 sm:$0xff] }
 0x21d   : > { %v1142_v10 = vrot.slane %v1141_v3, 1  ;;  %v1152_v11 = vrot.slane %v1151_v52, 4  ;;  %v1212_v31 = vsel %vm1172_vm11, %v1136_v22, %v1211_v28  ;;  %v1200_v36 = vadd.f32 %v1198_v33, %v2027_v24  ;;  %v1265_v24 = vld [vmem:[%s1858_s6 + $0x8] sm:$0xff] }
 0x21e   : > { %1289 = vmatpush.msrb.mxu0 %v1265_v24 }
 0x21f   : > { %v1153_v19 = vadd.f32 %v1152_v11, %v1151_v52  ;;  %v1143_v8 = vadd.f32 %v1142_v10, %v1141_v3 }
 0x220   : > { %1290 = vmatpush.msrb.mxu0 %v1264_v53 }
 0x221   : > { %v1154_v21 = vrot.slane %v1153_v19, 2  ;;  %v1213_v34 = vsel %vm1174_vm12, %v1143_v8, %v1212_v31 }
 0x222   : > { %v1214_v20 = vsel %vm1176_vm13, %v1150_v35, %v1213_v34 }
 0x223   : > { %v1155_v29 = vadd.f32 %v1154_v21, %v1153_v19 }
 0x225   : > { %v1156_v32 = vrot.slane %v1155_v29, 1 }
 0x227   : > { %v1157_v54 = vadd.f32 %v1156_v32, %v1155_v29 }
 0x229   : > { %v1215_v37 = vsel %vm1178_vm14, %v1157_v54, %v1214_v20 }
 0x22a   : > { %v2144_v38 = vadd.f32 %v1215_v37, %v1200_v36 }
 0x22c   : > { %1334 = vmatpush.msra.mxu3 %v2144_v38 }
 0x22d   : > { %1618 = vmatmul.msk.f32.vlgmr.msra.gmra.mxu3 %vm1295_vm1, %v684_v39 }
 0x25d   : > { %v1246_v42 = vpop.f32.mrf.mxu3 }
 0x25e   : > { %v1247_v43 = vadd.f32 %v1657_v41, %v1246_v42 }
 0x260   : > { %v1250_v44 = vmin.f32 %v1247_v43, 20.0  ;;  %vm1249_vm4 = vcmp.gt.f32.partialorder %v1247_v43, 20.0 }
 0x262   : > { %v1251_v46 = vmul.f32 1.442695, %v1250_v44 }
 0x264   : > { %1663 = vpow2.f32 %v1251_v46 }
 0x26a   : > { %v1664_v47 = vpop.eup %1663 }
 0x26b   : > { %v1253_v55 = vadd.f32 1.0, %v1664_v47  ;;  %v1256_v56 = vmul.f32 -0.5, %v1664_v47  ;;  %v1259_v58 = vand.u32 2147483647, %v1664_v47 }
 0x26d   : > { %1665 = vlog2.f32 %v1253_v55  ;;  %v1257_v57 = vadd.f32 1.0, %v1256_v56  ;;  %vm1260_vm2 = vcmp.lt.f32.partialorder %v1259_v58, 0.0004427343 }
 0x26f   : > { %v1258_v60 = vmul.f32 %v1664_v47, %v1257_v57 }
 0x273   : > { %v1666_v45 = vpop.eup %1665 }
 0x274   : > { %v1255_v59 = vmul.f32 0.6931472, %v1666_v45 }
 0x276   : > { %v1261_v61 = vsel %vm1260_vm2, %v1258_v60, %v1255_v59 }
 0x277   : > { %v1262_v51 = vsel %vm1249_vm4, %v1247_v43, %v1261_v61 }
 0x278   : > { %v1615_v62 = vadd.f32 -0.6931472, %v1262_v51 }
 0x27a   : > { %1616 = vmatmul.msk.f32.vlgmr.msrb.gmra.mxu0 %vm701_vm3, %v1615_v62 }
 0x2b0   : > { %v1336_v63 = vpop.f32.mrf.mxu3 }
 0x2b1   : > { %v1339_v0 = vmul.f32 %v1336_v63, %v1336_v63 }
 0x2b3   : > { %1341 = vrot.lane.b32.xlu1 %v1339_v0, %s1716_s23  ;;  %1345 = vrot.lane.b32.xlu2 %v1339_v0, %s1715_s21 }
 0x2f7   : > { %v1292_v1 = vpop.f32.mrf.mxu0 }
 0x2f8   : > { %v1293_v2 = vadd.f32 %v1658_v16, %v1292_v1 }
 0x2fa   : > { %1314 = vmatpush.msra.mxu1 %v1293_v2 }
 0x2fb   : > { %1617 = vmatmul.msk.f32.vlgmr.msra.gmra.mxu1 %vm1295_vm1, %v684_v39 }
 0x30d   : > { %v1346_v5 = vpop.permute.xlu2 %1345 }
 0x325   : > { %v1342_v4 = vpop.permute.xlu1 %1341 }
 0x326   : > { %v1344_v52 = vadd.f32 %v1342_v4, %v1339_v0 }
 0x328   : > { %v1348_v7 = vadd.f32 %v1346_v5, %v1344_v52 }
 0x32a   : > { %v1349_v6 = vadd.f32 1e-05, %v1348_v7 }
 0x32c   : > { %1667 = vrcp.f32 %v1349_v6 }
 0x332   : > { %v1668_v10 = vpop.eup %1667 }
 0x333   : > { %v1351_v11 = vmul.f32 %v1668_v10, %v1348_v7 }
 0x378   : > { %v1316_v3 = vpop.f32.mrf.mxu1 }
 0x379   : > { %1353 = vrot.lane.b32.xlu0 %v1316_v3, %s1716_s23  ;;  %1362 = vrot.lane.b32.xlu1 %v1316_v3, %s1714_s19 }
 0x37a   : > { %1358 = vrot.lane.b32.xlu2 %v1316_v3, %s1715_s21 }
 0x3d4   : > { %v1359_v50 = vpop.permute.xlu2 %1358 }
 0x3eb   : > { %v1363_v13 = vpop.permute.xlu1 %1362  ;;  %v1354_v14 = vpop.permute.xlu0 %1353 }
 0x3ec   : > { %v1365_v49 = vsel %vm701_vm3, %v1316_v3, %v1363_v13  ;;  %v1356_v17 = vmul.f32 %v1354_v14, %v1351_v11 }
 0x3ed   : > { %v1366_v18 = vsel %vm980_vm15, %v1365_v49, %v1359_v50 }
 0x3ee   : > { %v1367_v19 = vmul.f32 %v1366_v18, %v1336_v63  ;;  %v1357_v22 = vadd.f32 %v1356_v17, %v2015_v15 }
 0x3ef   : > { %1374 = sbr.rel (%p1619_p5) target bundleno = 1308 (0x51c), region = 96 }
 0x3f0   : > { %v1368_v48 = vadd.f32 %v1367_v19, %v2144_v38  ;;  %v1361_v23 = vadd.f32 %v1359_v50, %v1357_v22 }
 0x3f2   : > { %1370 = vst.msk [vmem:[#allocation3] sm:$0xff] %vm1037_vm0, %v1368_v48 }
 0x3f3   : > { %1369 = vst.msk [vmem:[#allocation2] sm:$0xff] %vm701_vm3, %v1361_v23 }
 0x3f4   : > { %v1385_v12 = vld [vmem:[%s2229_s13 + $0x18] sm:$0xff]  ;;  %v1384_v8 = vld [vmem:[%s2229_s13 + $0x10] sm:$0xff]  ;;  %v1375_v15 = vsel %vm701_vm3, %v1361_v23, 0.0  ;;  %v1383_v25 = vld [vmem:[%s2229_s13 + $0x8] sm:$0xff]  ;;  %vm1453_vm7 = vcmask 0  }
 0x3f5   : > { %1402 = vmatpush.msra.mxu0 %v1385_v12  ;;  %v1376_v21 = vrot.slane %v1375_v15, 4  ;;  %v1382_v9 = vld [vmem:[%s2229_s13] sm:$0xff]  ;;  %v1428_v32 = vld [vmem:[%s2250_s30 + $0x18] sm:$0xff]  ;;  %v1427_v33 = vld [vmem:[%s2250_s30 + $0x10] sm:$0xff] }
 0x3f6   : > { %1445 = vmatpush.msra.mxu1 %v1428_v32  ;;  %v1426_v34 = vld [vmem:[%s2250_s30 + $0x8] sm:$0xff]  ;;  %v1425_v35 = vld [vmem:[%s2250_s30] sm:$0xff]  ;;  %v1429_v55 = vld [vmem:[#allocation4] sm:$0x1] }
 0x3f7   : > { %1403 = vmatpush.msra.mxu0 %v1384_v8  ;;  %v1377_v27 = vadd.f32 %v1376_v21, %v1375_v15  ;;  %v1386_v54 = vld [vmem:[%s2251_s20] sm:$0x1] }
 0x3f8   : > { %1446 = vmatpush.msra.mxu1 %v1427_v33 }
 0x3f9   : > { %1404 = vmatpush.msra.mxu0 %v1383_v25  ;;  %v1378_v28 = vrot.slane %v1377_v27, 2 }
 0x3fa   : > { %1447 = vmatpush.msra.mxu1 %v1426_v34 }
 0x3fb   : > { %1405 = vmatpush.msra.mxu0 %v1382_v9  ;;  %v1379_v29 = vadd.f32 %v1378_v28, %v1377_v27 }
 0x3fc   : > { %1448 = vmatpush.msra.mxu1 %v1425_v35 }
 0x3fd   : > { %v1380_v30 = vrot.slane %v1379_v29, 1 }
 0x3ff   : > { %v1381_v31 = vadd.f32 %v1380_v30, %v1379_v29 }
 0x401   : > { %1620 = vmatmul.msk.f32.vlgmr.msra.gmra.mxu0 %vm701_vm3, %v1381_v31 }
 0x47e   : > { %v1407_v36 = vpop.f32.mrf.mxu0 }
 0x47f   : > { %v1408_v20 = vadd.f32 %v1407_v36, %v1386_v54 }
 0x481   : > { %v1411_v37 = vmin.f32 %v1408_v20, 20.0  ;;  %vm1410_vm6 = vcmp.gt.f32.partialorder %v1408_v20, 20.0 }
 0x483   : > { %v1412_v38 = vmul.f32 1.442695, %v1411_v37 }
 0x485   : > { %1669 = vpow2.f32 %v1412_v38 }
 0x48b   : > { %v1670_v39 = vpop.eup %1669 }
 0x48c   : > { %v1414_v26 = vadd.f32 1.0, %v1670_v39  ;;  %v1417_v40 = vmul.f32 -0.5, %v1670_v39  ;;  %v1420_v53 = vand.u32 2147483647, %v1670_v39 }
 0x48e   : > { %1671 = vlog2.f32 %v1414_v26  ;;  %v1418_v24 = vadd.f32 1.0, %v1417_v40  ;;  %vm1421_vm5 = vcmp.lt.f32.partialorder %v1420_v53, 0.0004427343 }
 0x490   : > { %v1419_v43 = vmul.f32 %v1670_v39, %v1418_v24 }
 0x494   : > { %v1672_v41 = vpop.eup %1671 }
 0x495   : > { %v1416_v42 = vmul.f32 0.6931472, %v1672_v41 }
 0x497   : > { %v1422_v44 = vsel %vm1421_vm5, %v1419_v43, %v1416_v42 }
 0x498   : > { %v1423_v46 = vsel %vm1410_vm6, %v1408_v20, %v1422_v44 }
 0x499   : > { %v1621_v47 = vadd.f32 -0.6931472, %v1423_v46 }
 0x49b   : > { %1622 = vmatmul.msk.f32.vlgmr.msra.gmra.mxu1 %vm701_vm3, %v1621_v47 }
 0x518   : > { %v1450_v56 = vpop.f32.mrf.mxu1 }
 0x519   : > { %v1451_v57 = vadd.f32 %v1450_v56, %v1429_v55 }
 0x51b   : > { %1454 = vst.msk [vmem:[#allocation5] sm:$0x1] %vm1453_vm7, %v1451_v57 }
 0x51c PF: > { %p1640_p6 = scmp.eq.s32.totalorder %s1817_s27, 3  ;;  %s1717_s16 = smov [#allocation5]  }
 0x51d   : > { %s1461_s25 = sshll.u32 %s1717_s16, 4  ;;  %s2252_s23 = sld [smem:[#allocation15_spill]]  ;;  %s1462_s25 = int_to_ptr.vmem [resolvable:$true] %s1461_s25 }
 0x523   : > { %s1463_s1 = sshll.u32 %s2252_s23, 4  ;;  %s1464_s1 = int_to_ptr.hbm [resolvable:$true] %s1463_s1 }
 0x524   : > { %1637 = dma.vmem_to_hbm [thread:$0]  (%p1640_p6), %s1462_s25, 16, %s1464_s1, [#allocation6]  }
 0x525   : > { %1706 = dma.done.wait (%p1640_p6), [#allocation6], 16  }
 0x526   : > { %1708 = vsyncadd (%p1640_p6), [#allocation6], 4294967280 }
 0x527 PF: > { %s2253_s29 = sld [smem:[#allocation8_spill]] }
 0x52d   : > { %s30_s26 = sadd.s32 1, %s2253_s29  }
 0x52e   : > { %p27_p7 = scmp.ge.s32.totalorder %s30_s26, 6  }
 0x530   :  { %29 = sbr.rel (!%p27_p7) target bundleno = 9 (0x9), region = 147 }
 0x535   :  { %1477 = vsyncpa [#allocation6], 1 }
 0x536   :  { %1479 = vsyncpa [#allocation6 + $0x1], 1 }

</bundles_post_ra>
